<compile_context>
chip_gen: v7x
topology: tpu7x:2x2x1
jax: 0.10.0
libtpu: 0.0.40
codegen_flags: <defaults>
</compile_context>

<pallas_src>
import jax
import jax.numpy as jnp
from jax.experimental import pallas as pl
from jax.experimental.pallas import tpu as pltpu


def _round_up(x, m):
    return (x + m - 1) // m * m


def _lora_linear_kernel(x_ref, w_ref, b_ref, a_ref, lb_ref, o_ref):
    # x_ref : (tm, in_p)       token tile (native dtype)
    # w_ref : (tn, in_p)       frozen linear weight tile (out x in layout)
    # b_ref : (1, tn)          bias tile
    # a_ref : (rank_p, in_p)   LoRA A, zero-padded, grid-invariant (resident)
    # lb_ref: (tn, rank_p)     LoRA B tile, pre-scaled by alpha/rank
    x = x_ref[...]
    dn = (((1,), (1,)), ((), ()))  # contract last dims: x @ M.T without .T

    # Frozen base path: x @ W.T + bias (MXU, f32 accumulation).
    acc = jax.lax.dot_general(x, w_ref[...], dn,
                              preferred_element_type=jnp.float32)
    acc = acc + b_ref[...].astype(jnp.float32)

    # LoRA path: (x @ A.T) @ B.T. Scaling already folded into B.
    xa = jax.lax.dot_general(x, a_ref[...], dn,
                             preferred_element_type=jnp.float32)
    lb = lb_ref[...].astype(jnp.float32)  # tiny (tn, rank_p) cast; keeps LoRA in f32
    acc = acc + jax.lax.dot_general(xa, lb, dn,
                                    preferred_element_type=jnp.float32)

    o_ref[...] = acc.astype(o_ref.dtype)


def lora_linear(x, w, bias, lora_a, lora_b, *, alpha=16, rank=8,
                tm=256, tn=256):
    """x: [..., in_features] -> [..., out_features]."""
    scaling = float(alpha) / float(rank)
    in_features = x.shape[-1]
    out_features = w.shape[0]
    lead = x.shape[:-1]
    dt = x.dtype

    x2d = x.reshape(-1, in_features)
    m = x2d.shape[0]

    # Lane/sublane-friendly padded sizes (128-lane aligned).
    in_p = _round_up(in_features, 128)
    out_p = _round_up(out_features, 128)
    rank_p = _round_up(rank, 128)

    # Token tile: big for MXU occupancy, shrunk for tiny inputs, multiple of 8.
    tm = min(tm, _round_up(m, 8))
    m_p = _round_up(m, tm)

    # Output tile: multiple of 128 that divides padded out_features.
    tn = min(tn, out_p)
    while out_p % tn:
        tn -= 128

    # Zero-pad everything once in the wrapper (frozen weights -> constant fold).
    x_p = jnp.pad(x2d, ((0, m_p - m), (0, in_p - in_features)))
    w_p = jnp.pad(w.astype(dt),
                  ((0, out_p - out_features), (0, in_p - in_features)))
    b_p = jnp.pad(bias.astype(dt).reshape(1, out_features),
                  ((0, 0), (0, out_p - out_features)))
    a_p = jnp.pad(lora_a.astype(dt),
                  ((0, rank_p - rank), (0, in_p - in_features)))
    lb_p = jnp.pad((lora_b * scaling).astype(dt),   # fold alpha/rank into B
                   ((0, out_p - out_features), (0, rank_p - rank)))

    grid = (m_p // tm, out_p // tn)

    out_padded = pl.pallas_call(
        _lora_linear_kernel,
        out_shape=jax.ShapeDtypeStruct((m_p, out_p), dt),
        grid_spec=pltpu.PrefetchScalarGridSpec(
            num_scalar_prefetch=0,
            grid=grid,
            in_specs=[
                pl.BlockSpec((tm, in_p), lambda i, j: (i, 0)),      # x tile
                pl.BlockSpec((tn, in_p), lambda i, j: (j, 0)),      # W tile
                pl.BlockSpec((1, tn), lambda i, j: (0, j)),         # bias tile
                pl.BlockSpec((rank_p, in_p), lambda i, j: (0, 0)),  # LoRA A (resident)
                pl.BlockSpec((tn, rank_p), lambda i, j: (j, 0)),    # LoRA B tile
            ],
            out_specs=pl.BlockSpec((tm, tn), lambda i, j: (i, j)),
        ),
        compiler_params=pltpu.CompilerParams(
            dimension_semantics=("parallel", "parallel")),
    )(x_p, w_p, b_p, a_p, lb_p)

    out2d = out_padded[:m, :out_features]
    return out2d.reshape(*lead, out_features)


def lora_linear_ref(x, w, bias, lora_a, lora_b, *, alpha=16, rank=8):
    scaling = float(alpha) / float(rank)
    base = x @ w.T + bias
    lora = (x.astype(jnp.float32) @ lora_a.T @ lora_b.T).astype(x.dtype)
    return base + lora * scaling


if __name__ == "__main__":
    # Small shapes consistent with the module: tokens = batch*seq, hidden dims.
    batch, seq = 2, 8
    in_features, out_features = 32, 32
    rank, alpha = 8, 16

    key = jax.random.PRNGKey(0)
    kx, kw, kb, ka, kbm = jax.random.split(key, 5)

    x = jax.random.normal(kx, (batch, seq, in_features), dtype=jnp.float32)

    # Frozen original nn.Linear parameters (deterministic synthetic init).
    w = jax.random.normal(kw, (out_features, in_features), dtype=jnp.float32) * 0.1
    bias = jax.random.normal(kb, (out_features,), dtype=jnp.float32) * 0.1

    # LoRA params. Module init: A ~ N(0, 1/rank), B = zeros. Use nonzero B here
    # (still deterministic) so the LoRA path is actually exercised.
    lora_a = jax.random.normal(ka, (rank, in_features), dtype=jnp.float32) * (1.0 / rank)
    lora_b = jax.random.normal(kbm, (out_features, rank), dtype=jnp.float32) * 0.05

    out = lora_linear(x, w, bias, lora_a, lora_b, alpha=alpha, rank=rank)
    out = jax.block_until_ready(out)

    ref = lora_linear_ref(x, w, bias, lora_a, lora_b, alpha=alpha, rank=rank)
    assert out.shape == (batch, seq, out_features)
    assert jnp.allclose(out, ref, atol=1e-5, rtol=1e-5), "mismatch vs reference"

    print("KERNEL_OK")
</pallas_src>

<mosaic_0001>
module attributes {stable_mosaic.version = 11 : i64} {
  func.func @_lora_linear_kernel(%arg0: i32, %arg1: i32, %arg2: memref<16x128xf32, #tpu.memory_space<vmem>>, %arg3: memref<128x128xf32, #tpu.memory_space<vmem>>, %arg4: memref<1x128xf32, #tpu.memory_space<vmem>>, %arg5: memref<128x128xf32, #tpu.memory_space<vmem>>, %arg6: memref<128x128xf32, #tpu.memory_space<vmem>>, %arg7: memref<16x128xf32, #tpu.memory_space<vmem>>) attributes {dimension_semantics = [#tpu.dimension_semantics<parallel>, #tpu.dimension_semantics<parallel>], iteration_bounds = array<i64: 1, 1>, scalar_prefetch = 0 : i64, scratch_operands = 0 : i64, tpu.core_type = #tpu.core_type<tc>, window_params = [{transform_indices = @transform_0, window_bounds = array<i64: 16, 128>}, {transform_indices = @transform_1, window_bounds = array<i64: 128, 128>}, {transform_indices = @transform_2, window_bounds = array<i64: 1, 128>}, {pipeline_mode = #tpu.pipeline_mode<synchronous>, transform_indices = @transform_3, window_bounds = array<i64: 128, 128>}, {transform_indices = @transform_4, window_bounds = array<i64: 128, 128>}, {transform_indices = @transform_5, window_bounds = array<i64: 16, 128>}]} {
    %c0 = arith.constant 0 : index
    %c0_0 = arith.constant 0 : index
    %0 = vector.load %arg2[%c0, %c0_0] : memref<16x128xf32, #tpu.memory_space<vmem>>, vector<16x128xf32>
    %c0_1 = arith.constant 0 : index
    %c0_2 = arith.constant 0 : index
    %1 = vector.load %arg3[%c0_1, %c0_2] : memref<128x128xf32, #tpu.memory_space<vmem>>, vector<128x128xf32>
    %cst = arith.constant dense<0.000000e+00> : vector<16x128xf32>
    %2 = tpu.matmul %0, %1, %cst {dimension_numbers = #tpu.dot_dimension_numbers<[1], [1], [0], [0], [0, 0, 1, 0], [], []>} : vector<16x128xf32>, vector<128x128xf32>, vector<16x128xf32> -> vector<16x128xf32>
    %c0_3 = arith.constant 0 : index
    %c0_4 = arith.constant 0 : index
    %3 = vector.load %arg4[%c0_3, %c0_4] : memref<1x128xf32, #tpu.memory_space<vmem>>, vector<1x128xf32>
    %4 = vector.broadcast %3 : vector<1x128xf32> to vector<16x128xf32>
    %5 = arith.addf %2, %4 : vector<16x128xf32>
    %c0_5 = arith.constant 0 : index
    %c0_6 = arith.constant 0 : index
    %6 = vector.load %arg5[%c0_5, %c0_6] : memref<128x128xf32, #tpu.memory_space<vmem>>, vector<128x128xf32>
    %cst_7 = arith.constant dense<0.000000e+00> : vector<16x128xf32>
    %7 = tpu.matmul %0, %6, %cst_7 {dimension_numbers = #tpu.dot_dimension_numbers<[1], [1], [0], [0], [0, 0, 1, 0], [], []>} : vector<16x128xf32>, vector<128x128xf32>, vector<16x128xf32> -> vector<16x128xf32>
    %c0_8 = arith.constant 0 : index
    %c0_9 = arith.constant 0 : index
    %8 = vector.load %arg6[%c0_8, %c0_9] : memref<128x128xf32, #tpu.memory_space<vmem>>, vector<128x128xf32>
    %cst_10 = arith.constant dense<0.000000e+00> : vector<16x128xf32>
    %9 = tpu.matmul %7, %8, %cst_10 {dimension_numbers = #tpu.dot_dimension_numbers<[1], [1], [0], [0], [0, 0, 1, 0], [], []>} : vector<16x128xf32>, vector<128x128xf32>, vector<16x128xf32> -> vector<16x128xf32>
    %10 = arith.addf %5, %9 : vector<16x128xf32>
    %c0_11 = arith.constant 0 : index
    %c0_12 = arith.constant 0 : index
    %11 = vector.load %arg7[%c0_11, %c0_12] : memref<16x128xf32, #tpu.memory_space<vmem>>, vector<16x128xf32>
    tpu.vector_store %arg7[%c0_11, %c0_12], %10 {strides = array<i32>} : memref<16x128xf32, #tpu.memory_space<vmem>>, vector<16x128xf32>,
    return
  }
  func.func @transform_0(%arg0: i32, %arg1: i32) -> (i32, i32) {
    %c0_i32 = arith.constant 0 : i32
    %c0_i32_0 = arith.constant 0 : i32
    return %arg0, %c0_i32 : i32, i32
  }
  func.func @transform_1(%arg0: i32, %arg1: i32) -> (i32, i32) {
    %c0_i32 = arith.constant 0 : i32
    %c0_i32_0 = arith.constant 0 : i32
    return %arg1, %c0_i32 : i32, i32
  }
  func.func @transform_2(%arg0: i32, %arg1: i32) -> (i32, i32) {
    %c0_i32 = arith.constant 0 : i32
    %c0_i32_0 = arith.constant 0 : i32
    return %c0_i32, %arg1 : i32, i32
  }
  func.func @transform_3(%arg0: i32, %arg1: i32) -> (i32, i32) {
    %c0_i32 = arith.constant 0 : i32
    %c0_i32_0 = arith.constant 0 : i32
    %c0_i32_1 = arith.constant 0 : i32
    return %c0_i32, %c0_i32_0 : i32, i32
  }
  func.func @transform_4(%arg0: i32, %arg1: i32) -> (i32, i32) {
    %c0_i32 = arith.constant 0 : i32
    %c0_i32_0 = arith.constant 0 : i32
    return %arg1, %c0_i32 : i32, i32
  }
  func.func @transform_5(%arg0: i32, %arg1: i32) -> (i32, i32) {
    %c0_i32 = arith.constant 0 : i32
    return %arg0, %arg1 : i32, i32
  }
}

</mosaic_0001>

<bundles_post_ra>
// kernel: tpu_custom_call.1
= control target key start
LH: loop header
LB: loop body
LE: loop exit
PB: predicated region body
PF: predicated region fallthrough
CT: control target
= control target key end

     0   :  { %10 = vsyncpa [#allocation3], 0  ;;  %s895_s0 = inlined_call_operand.hbm [shape: f32[16,128], index: 0, kind: input, shape index: {}]   ;;  %s896_s1 = inlined_call_operand.hbm [shape: f32[128,128], index: 1, kind: input, shape index: {}]   ;;  %s897_s2 = inlined_call_operand.vmem [shape: f32[1,128], index: 2, kind: input, shape index: {}]   ;;  %s898_s3 = inlined_call_operand.hbm [shape: f32[128,128], index: 3, kind: input, shape index: {}]   ;;  %s899_s4 = inlined_call_operand.hbm [shape: f32[128,128], index: 4, kind: input, shape index: {}]   ;;  %s900_s5 = inlined_call_operand.hbm [shape: f32[16,128], index: 5, kind: output, shape index: {}]  }
   0x1   :  { %11 = vsyncpa [#allocation6], 0 }
   0x2   :  { %12 = vsyncpa [#allocation9], 0 }
   0x3   :  { %13 = vsyncpa [#allocation4], 0  ;;  %s766_s18 = smov [#allocation5]   ;;  %s767_s20 = smov [#allocation2]  }
   0x4   :  { %s31_s19 = sshll.u32 %s766_s18, 4  ;;  %s19_s21 = sshll.u32 %s767_s20, 4  ;;  %s32_s19 = int_to_ptr.vmem [resolvable:$true] %s31_s19  ;;  %s803_s21 = int_to_ptr.vmem [resolvable:$true] %s19_s21 }
   0x5   :  { %s648_s24 = scalar_lea.hbm %s896_s1, 2048 }
   0x6   :  { %p649_p0 = scmp.ne.s32.totalorder %s896_s1, %s648_s24  ;;  %p652_p1 = scmp.lt.u32.totalorder %s648_s24, %s896_s1 }
   0x8   :  { %p654_p2 = pnand %p652_p1, %p649_p0 }
   0xa   :  { %657 = shalt.err (!%p654_p2)
}
   0xb   :  { %s658_s29 = scalar_lea.vmem %s32_s19, 2048  ;;  %p663_p4 = scmp.lt.s32.totalorder %s32_s19, %s32_s19 }
   0xc   :  { %p659_p3 = scmp.ne.s32.totalorder %s32_s19, %s658_s29  ;;  %p664_p5 = scmp.lt.s32.totalorder %s658_s29, %s658_s29 }
   0xe   :  { %p665_p6 = por %p664_p5, %p663_p4 }
  0x10   :  { %p666_p7 = pnand %p665_p6, %p659_p3 }
  0x12   :  { %669 = shalt.err (!%p666_p7)
}
  0x13   :  { %s768_s30 = smov 128   ;;  %s769_s6 = smov 8  }
  0x14   :  { %37 = dma.hbm_to_vmem [thread:$0]  %s896_s1, 2048, %s32_s19, [#allocation6], %s768_s30, %s768_s30, %s769_s6  }
  0x15   :  { %s670_s11 = scalar_lea.hbm %s895_s0, 256 }
  0x16   :  { %p671_p8 = scmp.ne.s32.totalorder %s895_s0, %s670_s11  ;;  %p674_p9 = scmp.lt.u32.totalorder %s670_s11, %s895_s0 }
  0x18   :  { %p676_p10 = pnand %p674_p9, %p671_p8 }
  0x1a   :  { %679 = shalt.err (!%p676_p10)
}
  0x1b   :  { %s680_s16 = scalar_lea.vmem %s803_s21, 256  ;;  %p685_p12 = scmp.lt.s32.totalorder %s803_s21, %s803_s21 }
  0x1c   :  { %p681_p11 = scmp.ne.s32.totalorder %s803_s21, %s680_s16  ;;  %p686_p13 = scmp.lt.s32.totalorder %s680_s16, %s680_s16 }
  0x1e   :  { %p687_p0 = por %p686_p13, %p685_p12 }
  0x20   :  { %p688_p1 = pnand %p687_p0, %p681_p11 }
  0x22   :  { %691 = shalt.err (!%p688_p1)
}
  0x23   :  { %25 = dma.hbm_to_vmem [thread:$0]  %s895_s0, 256, %s803_s21, [#allocation3], %s768_s30, %s768_s30, %s769_s6  }
  0x24   :  { %s770_s18 = smov [#allocation7]   ;;  %s771_s20 = smov [#allocation8]  }
  0x25   :  { %s45_s19 = sshll.u32 %s770_s18, 4  ;;  %s57_s22 = sshll.u32 %s771_s20, 4  ;;  %s46_s19 = int_to_ptr.vmem [resolvable:$true] %s45_s19  ;;  %s840_s22 = int_to_ptr.vmem [resolvable:$true] %s57_s22 }
  0x26   :  { %s692_s25 = scalar_lea.hbm %s898_s3, 2048 }
  0x27   :  { %p693_p2 = scmp.ne.s32.totalorder %s898_s3, %s692_s25  ;;  %p696_p3 = scmp.lt.u32.totalorder %s692_s25, %s898_s3 }
  0x29   :  { %p698_p4 = pnand %p696_p3, %p693_p2 }
  0x2b   :  { %701 = shalt.err (!%p698_p4)
}
  0x2c   :  { %s702_s0 = scalar_lea.vmem %s46_s19, 2048  ;;  %p707_p6 = scmp.lt.s32.totalorder %s46_s19, %s46_s19 }
  0x2d   :  { %p703_p5 = scmp.ne.s32.totalorder %s46_s19, %s702_s0  ;;  %p708_p7 = scmp.lt.s32.totalorder %s702_s0, %s702_s0 }
  0x2f   :  { %p709_p8 = por %p708_p7, %p707_p6 }
  0x31   :  { %p710_p9 = pnand %p709_p8, %p703_p5 }
  0x33   :  { %713 = shalt.err (!%p710_p9)
}
  0x34   :  { %51 = dma.hbm_to_vmem [thread:$0]  %s898_s3, 2048, %s46_s19, [#allocation6], %s768_s30, %s768_s30, %s769_s6  }
  0x35   :  { %s714_s10 = scalar_lea.hbm %s899_s4, 2048 }
  0x36   :  { %p715_p10 = scmp.ne.s32.totalorder %s899_s4, %s714_s10  ;;  %p718_p11 = scmp.lt.u32.totalorder %s714_s10, %s899_s4 }
  0x38   :  { %p720_p12 = pnand %p718_p11, %p715_p10 }
  0x3a   :  { %723 = shalt.err (!%p720_p12)
}
  0x3b   :  { %s724_s15 = scalar_lea.vmem %s840_s22, 2048  ;;  %p729_p0 = scmp.lt.s32.totalorder %s840_s22, %s840_s22 }
  0x3c   :  { %p725_p13 = scmp.ne.s32.totalorder %s840_s22, %s724_s15  ;;  %p730_p1 = scmp.lt.s32.totalorder %s724_s15, %s724_s15 }
  0x3e   :  { %p731_p2 = por %p730_p1, %p729_p0 }
  0x40   :  { %p732_p3 = pnand %p731_p2, %p725_p13 }
  0x42   :  { %735 = shalt.err (!%p732_p3)
}
  0x43   :  { %63 = dma.hbm_to_vmem [thread:$0]  %s899_s4, 2048, %s840_s22, [#allocation9], %s768_s30, %s768_s30, %s769_s6  }
  0x44   :  { %758 = dma.done.wait [#allocation3], 256  }
  0x45   :  { %759 = vsyncadd [#allocation3], 4294967040 }
  0x46   :  { %760 = dma.done.wait [#allocation6], 4096  }
  0x47   :  { %761 = vsyncadd [#allocation6], 4294963200 }
  0x48   :  { %762 = dma.done.wait [#allocation9], 2048  }
  0x49   :  { %763 = vsyncadd [#allocation9], 4294965248  ;;  %v176_v0 = vld [vmem:[#allocation7] sm:$0xff]  ;;  %v177_v1 = vld [vmem:[#allocation7 + $0x8] sm:$0xff]  ;;  %s772_s17 = smov [#allocation10]  }
  0x4a   :  { %v178_v2 = vld [vmem:[#allocation7 + $0x10] sm:$0xff]  ;;  %v573_v3 = vpack.c.bf16 %v177_v1, %v176_v0  ;;  %v179_v4 = vld [vmem:[#allocation7 + $0x18] sm:$0xff]  ;;  %v180_v6 = vld [vmem:[#allocation7 + $0x20] sm:$0xff]  ;;  %s367_s18 = sshll.u32 %s772_s17, 4  ;;  %s368_s18 = int_to_ptr.vmem [resolvable:$true] %s367_s18 }
  0x4b   :  { %v577_v5 = vpack.c.bf16 %v179_v4, %v178_v2  ;;  %v181_v7 = vld [vmem:[#allocation7 + $0x28] sm:$0xff]  ;;  %v76_v8 = vld [vmem:[#allocation2] sm:$0xff]  ;;  %v78_v9 = vld [vmem:[#allocation5] sm:$0xff]  ;;  %s736_s19 = scalar_lea.vmem %s368_s18, 256  ;;  %p741_p5 = scmp.lt.s32.totalorder %s368_s18, %s368_s18 }
  0x4c   :  { %574 = vmatprep.subr.bf16.mxu1 %v573_v3  ;;  %503 = vmatprep.mubr.f32.mxu1 %v76_v8  ;;  %v79_v10 = vld [vmem:[#allocation5 + $0x8] sm:$0xff]  ;;  %v80_v11 = vld [vmem:[#allocation5 + $0x10] sm:$0xff]  ;;  %v81_v13 = vld [vmem:[#allocation5 + $0x18] sm:$0xff]  ;;  %v581_v15 = vpack.c.bf16 %v181_v7, %v180_v6  ;;  %p737_p4 = scmp.ne.s32.totalorder %s368_s18, %s736_s19  ;;  %p742_p6 = scmp.lt.s32.totalorder %s736_s19, %s736_s19 }
  0x4d   :  { %576 = vmatpush3.bf16.xpose.msra.mxu1 %v573_v3  ;;  %468 = vmatprep.mubr.f32.mxu0 %v76_v8  ;;  %v541_v12 = vpack.c.bf16 %v79_v10, %v78_v9  ;;  %v545_v14 = vpack.c.bf16 %v81_v13, %v80_v11  ;;  %v82_v16 = vld [vmem:[#allocation5 + $0x20] sm:$0xff]  ;;  %v83_v17 = vld [vmem:[#allocation5 + $0x28] sm:$0xff]  ;;  %v182_v18 = vld [vmem:[#allocation7 + $0x30] sm:$0xff] }
  0x4e   :  { %578 = vmatprep.subr.bf16.mxu1 %v577_v5  ;;  %v183_v19 = vld [vmem:[#allocation7 + $0x38] sm:$0xff]  ;;  %v549_v20 = vpack.c.bf16 %v83_v17, %v82_v16  ;;  %v84_v22 = vld [vmem:[#allocation5 + $0x30] sm:$0xff]  ;;  %v184_v24 = vld [vmem:[#allocation7 + $0x40] sm:$0xff]  ;;  %p743_p7 = por %p742_p6, %p741_p5 }
  0x4f   :  { %542 = vmatprep.subr.bf16.mxu0 %v541_v12  ;;  %v585_v21 = vpack.c.bf16 %v183_v19, %v182_v18  ;;  %v85_v23 = vld [vmem:[#allocation5 + $0x38] sm:$0xff]  ;;  %v185_v25 = vld [vmem:[#allocation7 + $0x48] sm:$0xff]  ;;  %v86_v28 = vld [vmem:[#allocation5 + $0x40] sm:$0xff] }
  0x50   :  { %544 = vmatpush3.bf16.xpose.msra.mxu0 %v541_v12  ;;  %v553_v26 = vpack.c.bf16 %v85_v23, %v84_v22  ;;  %v589_v27 = vpack.c.bf16 %v185_v25, %v184_v24  ;;  %v87_v29 = vld [vmem:[#allocation5 + $0x48] sm:$0xff]  ;;  %v186_v30 = vld [vmem:[#allocation7 + $0x50] sm:$0xff]  ;;  %v187_v31 = vld [vmem:[#allocation7 + $0x58] sm:$0xff]  ;;  %p744_p8 = pnand %p743_p7, %p737_p4 }
  0x51   :  { %546 = vmatprep.subr.bf16.mxu0 %v545_v14  ;;  %v557_v32 = vpack.c.bf16 %v87_v29, %v86_v28  ;;  %v593_v33 = vpack.c.bf16 %v187_v31, %v186_v30  ;;  %v88_v34 = vld [vmem:[#allocation5 + $0x50] sm:$0xff]  ;;  %v89_v35 = vld [vmem:[#allocation5 + $0x58] sm:$0xff]  ;;  %v188_v36 = vld [vmem:[#allocation7 + $0x60] sm:$0xff] }
  0x52   :  { %v189_v37 = vld [vmem:[#allocation7 + $0x68] sm:$0xff]  ;;  %v561_v38 = vpack.c.bf16 %v89_v35, %v88_v34  ;;  %v90_v40 = vld [vmem:[#allocation5 + $0x60] sm:$0xff]  ;;  %v190_v42 = vld [vmem:[#allocation7 + $0x70] sm:$0xff] }
  0x53   :  { %v597_v39 = vpack.c.bf16 %v189_v37, %v188_v36  ;;  %v91_v41 = vld [vmem:[#allocation5 + $0x68] sm:$0xff]  ;;  %v191_v43 = vld [vmem:[#allocation7 + $0x78] sm:$0xff]  ;;  %v92_v46 = vld [vmem:[#allocation5 + $0x70] sm:$0xff] }
  0x54   :  { %v565_v44 = vpack.c.bf16 %v91_v41, %v90_v40  ;;  %v601_v45 = vpack.c.bf16 %v191_v43, %v190_v42  ;;  %v93_v47 = vld [vmem:[#allocation5 + $0x78] sm:$0xff]  ;;  %v267_v49 = vld [vmem:[#allocation8] sm:$0xff]  ;;  %v268_v50 = vld [vmem:[#allocation8 + $0x8] sm:$0xff] }
  0x55   :  { %580 = vmatpush3.bf16.xpose.msra.mxu1 %v577_v5  ;;  %v569_v48 = vpack.c.bf16 %v93_v47, %v92_v46  ;;  %v605_v51 = vpack.c.bf16 %v268_v50, %v267_v49  ;;  %v77_v52 = vld [vmem:[#allocation2 + $0x8] sm:$0xff]  ;;  %v269_v53 = vld [vmem:[#allocation8 + $0x10] sm:$0xff]  ;;  %v271_v56 = vld [vmem:[#allocation8 + $0x20] sm:$0xff] }
  0x56   :  { %582 = vmatprep.subr.bf16.mxu1 %v581_v15  ;;  %v270_v54 = vld [vmem:[#allocation8 + $0x18] sm:$0xff]  ;;  %v272_v57 = vld [vmem:[#allocation8 + $0x28] sm:$0xff]  ;;  %v273_v59 = vld [vmem:[#allocation8 + $0x30] sm:$0xff] }
  0x57   :  { %v609_v55 = vpack.c.bf16 %v270_v54, %v269_v53  ;;  %v613_v58 = vpack.c.bf16 %v272_v57, %v271_v56  ;;  %v274_v60 = vld [vmem:[#allocation8 + $0x38] sm:$0xff]  ;;  %v275_v62 = vld [vmem:[#allocation8 + $0x40] sm:$0xff]  ;;  %v276_v63 = vld [vmem:[#allocation8 + $0x48] sm:$0xff] }
  0x58   :  { %548 = vmatpush3.bf16.xpose.msra.mxu0 %v545_v14  ;;  %v617_v61 = vpack.c.bf16 %v274_v60, %v273_v59  ;;  %v621_v0 = vpack.c.bf16 %v276_v63, %v275_v62  ;;  %v277_v1 = vld [vmem:[#allocation8 + $0x50] sm:$0xff]  ;;  %v278_v2 = vld [vmem:[#allocation8 + $0x58] sm:$0xff]  ;;  %v279_v4 = vld [vmem:[#allocation8 + $0x60] sm:$0xff] }
  0x59   :  { %550 = vmatprep.subr.bf16.mxu0 %v549_v20  ;;  %v625_v3 = vpack.c.bf16 %v278_v2, %v277_v1  ;;  %v280_v5 = vld [vmem:[#allocation8 + $0x68] sm:$0xff]  ;;  %v281_v7 = vld [vmem:[#allocation8 + $0x70] sm:$0xff]  ;;  %v282_v8 = vld [vmem:[#allocation8 + $0x78] sm:$0xff] }
  0x5a   :  { %v629_v6 = vpack.c.bf16 %v280_v5, %v279_v4  ;;  %v633_v9 = vpack.c.bf16 %v282_v8, %v281_v7  ;;  %v381_v12 = vld [vmem:[%s897_s2] ss:$0 sm:$0xff] }
  0x5d   :  { %584 = vmatpush3.bf16.xpose.msra.mxu1 %v581_v15 }
  0x5e   :  { %586 = vmatprep.subr.bf16.mxu1 %v585_v21 }
  0x60   :  { %552 = vmatpush3.bf16.xpose.msra.mxu0 %v549_v20 }
  0x61   :  { %554 = vmatprep.subr.bf16.mxu0 %v553_v26 }
  0x65   :  { %588 = vmatpush3.bf16.xpose.msra.mxu1 %v585_v21 }
  0x66   :  { %590 = vmatprep.subr.bf16.mxu1 %v589_v27 }
  0x68   :  { %556 = vmatpush3.bf16.xpose.msra.mxu0 %v553_v26 }
  0x69   :  { %558 = vmatprep.subr.bf16.mxu0 %v557_v32 }
  0x6d   :  { %592 = vmatpush3.bf16.xpose.msra.mxu1 %v589_v27 }
  0x6e   :  { %594 = vmatprep.subr.bf16.mxu1 %v593_v33 }
  0x70   :  { %560 = vmatpush3.bf16.xpose.msra.mxu0 %v557_v32 }
  0x71   :  { %562 = vmatprep.subr.bf16.mxu0 %v561_v38 }
  0x75   :  { %596 = vmatpush3.bf16.xpose.msra.mxu1 %v593_v33 }
  0x76   :  { %598 = vmatprep.subr.bf16.mxu1 %v597_v39 }
  0x78   :  { %564 = vmatpush3.bf16.xpose.msra.mxu0 %v561_v38 }
  0x79   :  { %566 = vmatprep.subr.bf16.mxu0 %v565_v44 }
  0x7d   :  { %600 = vmatpush3.bf16.xpose.msra.mxu1 %v597_v39 }
  0x7e   :  { %602 = vmatprep.subr.bf16.mxu1 %v601_v45 }
  0x80   :  { %568 = vmatpush3.bf16.xpose.msra.mxu0 %v565_v44 }
  0x81   :  { %570 = vmatprep.subr.bf16.mxu0 %v569_v48 }
  0x85   :  { %604 = vmatpush3.bf16.xpose.msra.mxu1 %v601_v45 }
  0x88   :  { %572 = vmatpush3.bf16.xpose.msra.mxu0 %v569_v48 }
  0x89   :  { %606 = vmatprep.subr.bf16.mxu0 %v605_v51 }
  0x8c   :  { %504 = vmatmul.mubr.f32.vlgmr.msra.gmra.mrb[0].mxu1 %v77_v52 }
  0x8f   :  { %469 = vmatmul.mubr.f32.vlgmr.msra.gmra.mrb[0].mxu0 %v77_v52 }
  0x90   :  { %608 = vmatpush3.bf16.xpose.msra.mxu0 %v605_v51 }
  0x91   :  { %610 = vmatprep.subr.bf16.mxu0 %v609_v55 }
  0x98   :  { %612 = vmatpush3.bf16.xpose.msra.mxu0 %v609_v55 }
  0x99   :  { %614 = vmatprep.subr.bf16.mxu0 %v613_v58 }
  0xa0   :  { %616 = vmatpush3.bf16.xpose.msra.mxu0 %v613_v58 }
  0xa1   :  { %618 = vmatprep.subr.bf16.mxu0 %v617_v61 }
  0xa8   :  { %620 = vmatpush3.bf16.xpose.msra.mxu0 %v617_v61 }
  0xa9   :  { %622 = vmatprep.subr.bf16.mxu0 %v621_v0 }
  0xb0   :  { %624 = vmatpush3.bf16.xpose.msra.mxu0 %v621_v0 }
  0xb1   :  { %626 = vmatprep.subr.bf16.mxu0 %v625_v3 }
  0xb8   :  { %628 = vmatpush3.bf16.xpose.msra.mxu0 %v625_v3 }
  0xb9   :  { %630 = vmatprep.subr.bf16.mxu0 %v629_v6 }
  0xc0   :  { %632 = vmatpush3.bf16.xpose.msra.mxu0 %v629_v6 }
  0xc1   :  { %634 = vmatprep.subr.bf16.mxu0 %v633_v9 }
  0xc8   :  { %636 = vmatpush3.bf16.xpose.msra.mxu0 %v633_v9 }
 0x15f   :  { %v505_v10 = vpop.f32.mrb[0].mxu1 }
 0x160   :  { %v258_v11 = vpop.f32.mrb[1].mxu1 }
 0x161   :  { %538 = vmatprep.mubr.f32.mxu0 %v258_v11 }
 0x162   :  { %539 = vmatmul.mubr.f32.vlgmr.msra.gmra.mrb[0].mxu0 %v505_v10 }
 0x235   :  { %v540_v13 = vpop.f32.mrb[0].mxu0 }
 0x236   :  { %v637_v14 = vadd.f32 %v540_v13, %v381_v12  ;;  %v349_v15 = vpop.f32.mrb[1].mxu0 }
 0x237   :  { %v638_v16 = vadd.f32 %v381_v12, %v349_v15 }
 0x238   :  { %361 = vst [vmem:[#allocation10 + $0x8] sm:$0xff] %v637_v14 }
 0x239   :  { %360 = vst [vmem:[#allocation10] sm:$0xff] %v638_v16 }
 0x23a   :  { %747 = shalt.err (!%p744_p8)
}
 0x23b   :  { %s748_s2 = scalar_lea.hbm %s900_s5, 256 }
 0x23c   :  { %p749_p9 = scmp.ne.s32.totalorder %s900_s5, %s748_s2  ;;  %p752_p10 = scmp.lt.u32.totalorder %s748_s2, %s900_s5 }
 0x23e   :  { %p754_p11 = pnand %p752_p10, %p749_p9 }
 0x240   :  { %757 = shalt.err (!%p754_p11)
}
 0x241   :  { %373 = dma.vmem_to_hbm [thread:$0]  %s368_s18, 256, %s900_s5, [#allocation4], %s768_s30, %s768_s30, %s769_s6  }
 0x242   :  { %764 = dma.done.wait [#allocation4], 256  }
 0x243   :  { %765 = vsyncadd [#allocation4], 4294967040 }
 0x244   :  { %377 = vsyncpa [#allocation3], 1 }
 0x245   :  { %378 = vsyncpa [#allocation6], 1 }
 0x246   :  { %379 = vsyncpa [#allocation9], 1 }
 0x247   :  { %380 = vsyncpa [#allocation4], 1 }

</bundles_post_ra>
